<compile_context>
chip_gen: v7x
topology: tpu7x:2x2x1
jax: 0.10.0
libtpu: 0.0.40
codegen_flags: <defaults>
</compile_context>

<pallas_src>
import math

import jax
import jax.numpy as jnp
from jax.experimental import pallas as pl
from jax.experimental.pallas import tpu as pltpu

D_IN = 28 * 28   # 784
HID = 128
N_OUT = 10
N_PAD = 128      # lane-dense padded output width


def _round_up(n, m):
    return ((n + m - 1) // m) * m


def simple_nn_kernel(x_ref, w1_ref, b1_ref, w2_ref, b2_ref, o_ref):
    # x_ref:  (TB, 784)  f32 flattened input tile (cast to bf16 in-kernel)
    # w1_ref: (784, 128) bf16 fc1 weight (in, out)
    # b1_ref: (1, 128)   f32
    # w2_ref: (128, 128) bf16 fc2 weight padded to 128 output cols (in, out)
    # b2_ref: (1, 128)   f32, padded cols hold -1e30
    # o_ref:  (TB, 128)  bf16 log-probs (only first 10 cols meaningful)

    # In-kernel bf16 cast: VPU work hidden under the x DMA.
    x = x_ref[...].astype(jnp.bfloat16)

    # fc1 + ReLU: bf16 operands, f32 MXU accumulation.
    h = jnp.dot(x, w1_ref[...], preferred_element_type=jnp.float32)
    h = jnp.maximum(h + b1_ref[...], 0.0)

    # Dropout(p=0.2): identity in eval mode (PyTorch .eval()).
    # TODO(synk): training-mode dropout would use pltpu.prng_seed / prng_random_bits.

    # fc2 (padded to 128 lane-dense output columns).
    logits = (
        jnp.dot(h.astype(jnp.bfloat16), w2_ref[...],
                preferred_element_type=jnp.float32)
        + b2_ref[...]
    )

    # LogSoftmax over dim=1 (numerically stable, f32). Padded columns carry a
    # -1e30 bias, so exp(shifted) underflows to 0 and they do not perturb the
    # log-sum-exp of the 10 real classes. -1e30 stays finite in bf16.
    m = jnp.max(logits, axis=1, keepdims=True)
    shifted = logits - m
    lse = jnp.log(jnp.sum(jnp.exp(shifted), axis=1, keepdims=True))
    o_ref[...] = (shifted - lse).astype(o_ref.dtype)


def prepare_params(w1, b1, w2, b2):
    """One-time prep: transpose to (in, out), cast matmul weights to bf16,
    and pad fc2 to a lane-dense 128-wide output."""
    w1_t = jnp.asarray(w1, jnp.float32).T.astype(jnp.bfloat16)       # (784, 128)
    b1_2d = jnp.asarray(b1, jnp.float32)[None, :]                    # (1, 128)

    w2_t = jnp.asarray(w2, jnp.float32).T                            # (128, 10)
    w2_pad = jnp.zeros((HID, N_PAD), jnp.float32)
    w2_pad = w2_pad.at[:, :N_OUT].set(w2_t).astype(jnp.bfloat16)     # (128, 128)

    b2_pad = jnp.full((1, N_PAD), -1e30, jnp.float32)
    b2_pad = b2_pad.at[0, :N_OUT].set(jnp.asarray(b2, jnp.float32))  # (1, 128)
    return w1_t, b1_2d, w2_pad, b2_pad


def simple_nn_forward(x_nchw, params):
    """x_nchw: (B, 1, 28, 28) float32. Returns (B, 10) f32 log-probs."""
    w1_t, b1_2d, w2_pad, b2_pad = params
    B = x_nchw.shape[0]

    # Flatten only; keep f32 — the bf16 cast happens inside the kernel.
    x_flat = x_nchw.reshape(B, D_IN)

    # Batch tile: multiple of 16 (bf16 output sublane packing), capped at 2048,
    # and sized so large batches get >= 4 grid steps (v7x megacore sharding).
    TB = min(2048, max(16, _round_up(pl.cdiv(B, 4), 16)))
    Bp = _round_up(B, TB)
    if Bp != B:
        # Only hit for batch sizes not divisible by TB (common pow-2 batches
        # skip this extra pass over x entirely).
        x_flat = jnp.pad(x_flat, ((0, Bp - B), (0, 0)))

    grid = (Bp // TB,)

    # VMEM footprint: double-buffered x tile + out tile + resident weights,
    # plus margin. Clamped to 32 MiB (v6e/v7x default scoped limit, <50% of
    # v7x's 64 MiB per-TC VMEM).
    weight_bytes = D_IN * HID * 2 + HID * 4 + HID * N_PAD * 2 + N_PAD * 4
    vmem_need = (2 * TB * D_IN * 4          # x tile, f32, double-buffered
                 + 2 * TB * N_PAD * 2       # out tile, bf16, double-buffered
                 + 2 * weight_bytes         # resident weights (buffered)
                 + (4 << 20))               # compiler scratch margin
    vmem_limit = int(min(max(vmem_need, 8 << 20), 32 << 20))

    cost = pl.CostEstimate(
        flops=2 * Bp * (D_IN * HID + HID * N_PAD),
        transcendentals=Bp * N_PAD,
        bytes_accessed=(Bp * D_IN * 4          # x (f32)
                        + D_IN * HID * 2       # w1 (bf16)
                        + HID * 4              # b1 (f32)
                        + HID * N_PAD * 2      # w2 (bf16)
                        + N_PAD * 4            # b2 (f32)
                        + Bp * N_PAD * 2),     # out (bf16)
    )

    out = pl.pallas_call(
        simple_nn_kernel,
        out_shape=jax.ShapeDtypeStruct((Bp, N_PAD), jnp.bfloat16),
        grid=grid,
        in_specs=[
            pl.BlockSpec((TB, D_IN), lambda i: (i, 0)),    # x: tiled over batch
            pl.BlockSpec((D_IN, HID), lambda i: (0, 0)),   # w1: resident
            pl.BlockSpec((1, HID), lambda i: (0, 0)),      # b1: resident
            pl.BlockSpec((HID, N_PAD), lambda i: (0, 0)),  # w2: resident
            pl.BlockSpec((1, N_PAD), lambda i: (0, 0)),    # b2: resident
        ],
        out_specs=pl.BlockSpec((TB, N_PAD), lambda i: (i, 0)),
        compiler_params=pltpu.CompilerParams(
            dimension_semantics=("parallel",),
            vmem_limit_bytes=vmem_limit,
        ),
        cost_estimate=cost,
    )(x_flat, w1_t, b1_2d, w2_pad, b2_pad)

    # Contract: only the first 10 columns / first B rows are meaningful.
    return out[:B, :N_OUT].astype(jnp.float32)


def init_params(key):
    """Deterministic init mimicking torch.nn.Linear default (U[-1/sqrt(fan_in), +])."""
    k1, k2, k3, k4 = jax.random.split(key, 4)
    bound1 = 1.0 / math.sqrt(D_IN)
    w1 = jax.random.uniform(k1, (HID, D_IN), jnp.float32, -bound1, bound1)
    b1 = jax.random.uniform(k2, (HID,), jnp.float32, -bound1, bound1)
    bound2 = 1.0 / math.sqrt(HID)
    w2 = jax.random.uniform(k3, (N_OUT, HID), jnp.float32, -bound2, bound2)
    b2 = jax.random.uniform(k4, (N_OUT,), jnp.float32, -bound2, bound2)
    return w1, b1, w2, b2


if __name__ == "__main__":
    key = jax.random.PRNGKey(0)
    k_x, k_p = jax.random.split(key)

    B = 2
    x = jax.random.normal(k_x, (B, 1, 28, 28), jnp.float32)  # NCHW, MNIST-like
    w1, b1, w2, b2 = init_params(k_p)

    params = prepare_params(w1, b1, w2, b2)
    forward = jax.jit(simple_nn_forward)
    out = forward(x, params)
    out = jax.block_until_ready(out)

    # Pure-JAX reference with the same bf16-operand / f32-accumulate recipe
    # (eval-mode dropout = identity). Kernel additionally stores bf16 log-probs,
    # hence the ~2e-2 tolerance.
    x_flat = x.reshape(B, -1)
    h_ref = jnp.maximum(
        jnp.dot(x_flat.astype(jnp.bfloat16), w1.T.astype(jnp.bfloat16),
                preferred_element_type=jnp.float32) + b1, 0.0)
    logits_ref = jnp.dot(h_ref.astype(jnp.bfloat16), w2.T.astype(jnp.bfloat16),
                         preferred_element_type=jnp.float32) + b2
    ref = jax.nn.log_softmax(logits_ref, axis=1)

    # Loose sanity check against a full-f32 reference (bf16 matmul + bf16 store).
    ref_f32 = jax.nn.log_softmax(
        jnp.maximum(x_flat @ w1.T + b1, 0.0) @ w2.T + b2, axis=1)

    assert out.shape == (B, N_OUT)
    assert bool(jnp.all(jnp.isfinite(out)))
    assert jnp.allclose(out, ref, atol=2e-2, rtol=2e-2)
    assert jnp.allclose(out, ref_f32, atol=5e-2, rtol=5e-2)

    print("KERNEL_OK")
</pallas_src>

<mosaic_0001>
module attributes {stable_mosaic.version = 11 : i64} {
  func.func @simple_nn_kernel(%arg0: i32, %arg1: memref<16x784xf32, #tpu.memory_space<vmem>>, %arg2: memref<784x128xbf16, #tpu.memory_space<vmem>>, %arg3: memref<1x128xf32, #tpu.memory_space<vmem>>, %arg4: memref<128x128xbf16, #tpu.memory_space<vmem>>, %arg5: memref<1x128xf32, #tpu.memory_space<vmem>>, %arg6: memref<16x128xbf16, #tpu.memory_space<vmem>>) attributes {dimension_semantics = [#tpu.dimension_semantics<parallel>], iteration_bounds = array<i64: 1>, scalar_prefetch = 0 : i64, scratch_operands = 0 : i64, tpu.core_type = #tpu.core_type<tc>, window_params = [{transform_indices = @transform_0, window_bounds = array<i64: 16, 784>}, {pipeline_mode = #tpu.pipeline_mode<synchronous>, transform_indices = @transform_1, window_bounds = array<i64: 784, 128>}, {pipeline_mode = #tpu.pipeline_mode<synchronous>, transform_indices = @transform_2, window_bounds = array<i64: 1, 128>}, {pipeline_mode = #tpu.pipeline_mode<synchronous>, transform_indices = @transform_3, window_bounds = array<i64: 128, 128>}, {pipeline_mode = #tpu.pipeline_mode<synchronous>, transform_indices = @transform_4, window_bounds = array<i64: 1, 128>}, {transform_indices = @transform_5, window_bounds = array<i64: 16, 128>}]} {
    %c0 = arith.constant 0 : index
    %c0_0 = arith.constant 0 : index
    %0 = vector.load %arg1[%c0, %c0_0] : memref<16x784xf32, #tpu.memory_space<vmem>>, vector<16x784xf32>
    %1 = arith.truncf %0 : vector<16x784xf32> to vector<16x784xbf16>
    %c0_1 = arith.constant 0 : index
    %c0_2 = arith.constant 0 : index
    %2 = vector.load %arg2[%c0_1, %c0_2] : memref<784x128xbf16, #tpu.memory_space<vmem>>, vector<784x128xbf16>
    %cst = arith.constant dense<0.000000e+00> : vector<16x128xf32>
    %3 = tpu.matmul %1, %2, %cst {dimension_numbers = #tpu.dot_dimension_numbers<[1], [0], [0], [1], [0, 0, 1, 1], [], []>} : vector<16x784xbf16>, vector<784x128xbf16>, vector<16x128xf32> -> vector<16x128xf32>
    %c0_3 = arith.constant 0 : index
    %c0_4 = arith.constant 0 : index
    %4 = vector.load %arg3[%c0_3, %c0_4] : memref<1x128xf32, #tpu.memory_space<vmem>>, vector<1x128xf32>
    %5 = vector.broadcast %4 : vector<1x128xf32> to vector<16x128xf32>
    %6 = arith.addf %3, %5 : vector<16x128xf32>
    %cst_5 = arith.constant 0.000000e+00 : f32
    %7 = vector.broadcast %cst_5 : f32 to vector<16x128xf32>
    %8 = arith.maximumf %6, %7 : vector<16x128xf32>
    %9 = arith.truncf %8 : vector<16x128xf32> to vector<16x128xbf16>
    %c0_6 = arith.constant 0 : index
    %c0_7 = arith.constant 0 : index
    %10 = vector.load %arg4[%c0_6, %c0_7] : memref<128x128xbf16, #tpu.memory_space<vmem>>, vector<128x128xbf16>
    %cst_8 = arith.constant dense<0.000000e+00> : vector<16x128xf32>
    %11 = tpu.matmul %9, %10, %cst_8 {dimension_numbers = #tpu.dot_dimension_numbers<[1], [0], [0], [1], [0, 0, 1, 1], [], []>} : vector<16x128xbf16>, vector<128x128xbf16>, vector<16x128xf32> -> vector<16x128xf32>
    %c0_9 = arith.constant 0 : index
    %c0_10 = arith.constant 0 : index
    %12 = vector.load %arg5[%c0_9, %c0_10] : memref<1x128xf32, #tpu.memory_space<vmem>>, vector<1x128xf32>
    %13 = vector.broadcast %12 : vector<1x128xf32> to vector<16x128xf32>
    %14 = arith.addf %11, %13 : vector<16x128xf32>
    %cst_11 = arith.constant dense<0xFF800000> : vector<16xf32>
    %15 = vector.multi_reduction <maximumf>, %14, %cst_11 [1] : vector<16x128xf32> to vector<16xf32>
    %16 = vector.shape_cast %15 : vector<16xf32> to vector<16x1xf32>
    %17 = vector.broadcast %16 : vector<16x1xf32> to vector<16x128xf32>
    %18 = arith.subf %14, %17 : vector<16x128xf32>
    %19 = math.exp %18 : vector<16x128xf32>
    %cst_12 = arith.constant dense<0.000000e+00> : vector<16xf32>
    %20 = vector.multi_reduction <add>, %19, %cst_12 [1] : vector<16x128xf32> to vector<16xf32>
    %21 = vector.shape_cast %20 : vector<16xf32> to vector<16x1xf32>
    %22 = math.log %21 : vector<16x1xf32>
    %23 = vector.broadcast %22 : vector<16x1xf32> to vector<16x128xf32>
    %24 = arith.subf %18, %23 : vector<16x128xf32>
    %25 = arith.truncf %24 : vector<16x128xf32> to vector<16x128xbf16>
    %c0_13 = arith.constant 0 : index
    %c0_14 = arith.constant 0 : index
    %26 = vector.load %arg6[%c0_13, %c0_14] : memref<16x128xbf16, #tpu.memory_space<vmem>>, vector<16x128xbf16>
    tpu.vector_store %arg6[%c0_13, %c0_14], %25 {strides = array<i32>} : memref<16x128xbf16, #tpu.memory_space<vmem>>, vector<16x128xbf16>,
    return
  }
  func.func @transform_0(%arg0: i32) -> (i32, i32) {
    %c0_i32 = arith.constant 0 : i32
    %c0_i32_0 = arith.constant 0 : i32
    return %arg0, %c0_i32 : i32, i32
  }
  func.func @transform_1(%arg0: i32) -> (i32, i32) {
    %c0_i32 = arith.constant 0 : i32
    %c0_i32_0 = arith.constant 0 : i32
    %c0_i32_1 = arith.constant 0 : i32
    return %c0_i32, %c0_i32_0 : i32, i32
  }
  func.func @transform_2(%arg0: i32) -> (i32, i32) {
    %c0_i32 = arith.constant 0 : i32
    %c0_i32_0 = arith.constant 0 : i32
    %c0_i32_1 = arith.constant 0 : i32
    return %c0_i32, %c0_i32_0 : i32, i32
  }
  func.func @transform_3(%arg0: i32) -> (i32, i32) {
    %c0_i32 = arith.constant 0 : i32
    %c0_i32_0 = arith.constant 0 : i32
    %c0_i32_1 = arith.constant 0 : i32
    return %c0_i32, %c0_i32_0 : i32, i32
  }
  func.func @transform_4(%arg0: i32) -> (i32, i32) {
    %c0_i32 = arith.constant 0 : i32
    %c0_i32_0 = arith.constant 0 : i32
    %c0_i32_1 = arith.constant 0 : i32
    return %c0_i32, %c0_i32_0 : i32, i32
  }
  func.func @transform_5(%arg0: i32) -> (i32, i32) {
    %c0_i32 = arith.constant 0 : i32
    %c0_i32_0 = arith.constant 0 : i32
    return %arg0, %c0_i32 : i32, i32
  }
}

</mosaic_0001>

<bundles_post_ra>
// kernel: simple_nn_forward.1
= control target key start
LH: loop header
LB: loop body
LE: loop exit
PB: predicated region body
PF: predicated region fallthrough
CT: control target
= control target key end

     0   :  { %10 = vsyncpa [#allocation3], 0  ;;  %s1039_s18 = smov [#allocation2]   ;;  %s1174_s0 = inlined_call_operand.vmem [shape: f32[16,784], index: 0, kind: input, shape index: {}]   ;;  %s1175_s1 = inlined_call_operand.hbm [shape: bf16[784,128], index: 1, kind: input, shape index: {}]   ;;  %s1176_s2 = inlined_call_operand.vmem [shape: f32[1,128], index: 2, kind: input, shape index: {}]   ;;  %s1177_s3 = inlined_call_operand.vmem [shape: bf16[128,128], index: 3, kind: input, shape index: {}]   ;;  %s1178_s4 = inlined_call_operand.vmem [shape: f32[1,128], index: 4, kind: input, shape index: {}]   ;;  %s1179_s5 = inlined_call_operand.vmem [shape: bf16[16,128], index: 5, kind: output, shape index: {}]  }
   0x1   :  { %s18_s19 = sshll.u32 %s1039_s18, 4  ;;  %s1015_s22 = scalar_lea.hbm %s1175_s1, 6272  ;;  %s19_s19 = int_to_ptr.vmem [resolvable:$true] %s18_s19 }
   0x2   :  { %p1016_p0 = scmp.ne.s32.totalorder %s1175_s1, %s1015_s22  ;;  %p1019_p1 = scmp.lt.u32.totalorder %s1015_s22, %s1175_s1 }
   0x4   :  { %p1021_p2 = pnand %p1019_p1, %p1016_p0 }
   0x6   :  { %1024 = shalt.err (!%p1021_p2)
}
   0x7   :  { %s1025_s27 = scalar_lea.vmem %s19_s19, 6272  ;;  %p1030_p4 = scmp.lt.s32.totalorder %s19_s19, %s19_s19 }
   0x8   :  { %p1026_p3 = scmp.ne.s32.totalorder %s19_s19, %s1025_s27  ;;  %p1031_p5 = scmp.lt.s32.totalorder %s1025_s27, %s1025_s27 }
   0xa   :  { %p1032_p6 = por %p1031_p5, %p1030_p4 }
   0xc   :  { %p1033_p7 = pnand %p1032_p6, %p1026_p3 }
   0xe   :  { %1036 = shalt.err (!%p1033_p7)
}
   0xf   :  { %s1040_s28 = smov 64   ;;  %s1041_s29 = smov 4  }
  0x10   :  { %24 = dma.hbm_to_vmem [thread:$0]  %s1175_s1, 6272, %s19_s19, [#allocation3], %s1040_s28, %s1040_s28, %s1041_s29  }
  0x11   :  { %1037 = dma.done.wait [#allocation3], 6272  }
  0x12   :  { %1038 = vsyncadd [#allocation3], 4294961024  ;;  %v950_v0 = vld [vmem:[#allocation2 + $0x40] sm:$0xff]   ;;  %v954_v4 = vld [vmem:[#allocation2 + $0x48] sm:$0xff]   ;;  %v1042_v43 = vmov 0.0   ;;  %vm1043_vm0 = vmmov 0  }
  0x13   :  { %v951_v1 = vld [vmem:[#allocation2] sm:$0xff]   ;;  %842 = vmatprep.subr.bf16.mxu0 %v950_v0  ;;  %v955_v5 = vld [vmem:[#allocation2 + $0x8] sm:$0xff]   ;;  %v958_v8 = vld [vmem:[#allocation2 + $0x50] sm:$0xff]   ;;  %vm455_vm1 = vcmask 130048  }
  0x14   :  { %v952_v2 = vld [vmem:[#allocation2 + $0xc0] sm:$0xff]   ;;  %843 = vmatpush3.bf16.msra.mxu0 %v951_v1  ;;  %v956_v6 = vld [vmem:[#allocation2 + $0xc8] sm:$0xff]   ;;  %v959_v9 = vld [vmem:[#allocation2 + $0x10] sm:$0xff]  }
  0x15   :  { %v953_v3 = vld [vmem:[#allocation2 + $0x80] sm:$0xff]   ;;  %864 = vmatprep.subr.bf16.mxu1 %v952_v2  ;;  %844 = vmatprep.subr.bf16.mxu0 %v954_v4  ;;  %v957_v7 = vld [vmem:[#allocation2 + $0x88] sm:$0xff]   ;;  %v960_v10 = vld [vmem:[#allocation2 + $0xd0] sm:$0xff]  }
  0x16   :  { %865 = vmatpush3.bf16.msra.mxu1 %v953_v3  ;;  %v961_v11 = vld [vmem:[#allocation2 + $0x90] sm:$0xff]   ;;  %v962_v12 = vld [vmem:[#allocation2 + $0x58] sm:$0xff]   ;;  %v966_v16 = vld [vmem:[#allocation2 + $0x60] sm:$0xff]  }
  0x17   :  { %866 = vmatprep.subr.bf16.mxu1 %v956_v6  ;;  %v963_v13 = vld [vmem:[#allocation2 + $0x18] sm:$0xff]   ;;  %v967_v17 = vld [vmem:[#allocation2 + $0x20] sm:$0xff]   ;;  %v970_v20 = vld [vmem:[#allocation2 + $0x68] sm:$0xff]  }
  0x18   :  { %845 = vmatpush3.bf16.msra.mxu0 %v955_v5  ;;  %v964_v14 = vld [vmem:[#allocation2 + $0xd8] sm:$0xff]   ;;  %v968_v18 = vld [vmem:[#allocation2 + $0xe0] sm:$0xff]   ;;  %v971_v21 = vld [vmem:[#allocation2 + $0x28] sm:$0xff]  }
  0x19   :  { %846 = vmatprep.subr.bf16.mxu0 %v958_v8  ;;  %v965_v15 = vld [vmem:[#allocation2 + $0x98] sm:$0xff]   ;;  %v969_v19 = vld [vmem:[#allocation2 + $0xa0] sm:$0xff]   ;;  %v972_v22 = vld [vmem:[#allocation2 + $0xe8] sm:$0xff]  }
  0x1a   :  { %867 = vmatpush3.bf16.msra.mxu1 %v957_v7  ;;  %v973_v23 = vld [vmem:[#allocation2 + $0xa8] sm:$0xff]   ;;  %v974_v24 = vld [vmem:[#allocation2 + $0x70] sm:$0xff]   ;;  %v978_v28 = vld [vmem:[#allocation2 + $0x78] sm:$0xff]  }
  0x1b   :  { %868 = vmatprep.subr.bf16.mxu1 %v960_v10  ;;  %v975_v25 = vld [vmem:[#allocation2 + $0x30] sm:$0xff]   ;;  %v979_v29 = vld [vmem:[#allocation2 + $0x38] sm:$0xff]   ;;  %v36_v31 = vld [vmem:[%s1174_s0 + $0x8] sm:$0xff] }
  0x1c   :  { %847 = vmatpush3.bf16.msra.mxu0 %v959_v9  ;;  %v976_v26 = vld [vmem:[#allocation2 + $0xf0] sm:$0xff]   ;;  %v980_v30 = vld [vmem:[#allocation2 + $0xf8] sm:$0xff]   ;;  %v43_v32 = vld [vmem:[%s1174_s0 + $0x40] sm:$0xff] }
  0x1d   :  { %848 = vmatprep.subr.bf16.mxu0 %v962_v12  ;;  %v977_v27 = vld [vmem:[#allocation2 + $0xb0] sm:$0xff]   ;;  %v50_v33 = vpack.c.bf16 %v43_v32, %v36_v31  ;;  %v981_v34 = vld [vmem:[#allocation2 + $0xb8] sm:$0xff]   ;;  %v35_v35 = vld [vmem:[%s1174_s0] sm:$0xff] }
  0x1e   :  { %869 = vmatpush3.bf16.msra.mxu1 %v961_v11  ;;  %v42_v36 = vld [vmem:[%s1174_s0 + $0x38] sm:$0xff]  ;;  %v982_v38 = vld [vmem:[#allocation2 + $0x140] sm:$0xff]   ;;  %v45_v40 = vld [vmem:[%s1174_s0 + $0x50] sm:$0xff] }
  0x1f   :  { %870 = vmatprep.subr.bf16.mxu1 %v964_v14  ;;  %491 = vmatprep.mubr.bf16.mxu0 %v50_v33  ;;  %v49_v37 = vpack.c.bf16 %v42_v36, %v35_v35  ;;  %v38_v39 = vld [vmem:[%s1174_s0 + $0x18] sm:$0xff]  ;;  %v983_v42 = vld [vmem:[#allocation2 + $0x100] sm:$0xff]   ;;  %v37_v44 = vld [vmem:[%s1174_s0 + $0x10] sm:$0xff] }
  0x20   :  { %849 = vmatpush3.bf16.msra.mxu0 %v963_v13  ;;  %v52_v41 = vpack.c.bf16 %v45_v40, %v38_v39  ;;  %v44_v45 = vld [vmem:[%s1174_s0 + $0x48] sm:$0xff]  ;;  %v986_v49 = vld [vmem:[#allocation2 + $0x150] sm:$0xff]   ;;  %v988_v51 = vld [vmem:[#allocation2 + $0x158] sm:$0xff]  }
  0x21   :  { %850 = vmatprep.subr.bf16.mxu0 %v966_v16  ;;  %v51_v46 = vpack.c.bf16 %v44_v45, %v37_v44  ;;  %v984_v47 = vld [vmem:[#allocation2 + $0x148] sm:$0xff]   ;;  %v987_v50 = vld [vmem:[#allocation2 + $0x110] sm:$0xff]   ;;  %v989_v52 = vld [vmem:[#allocation2 + $0x118] sm:$0xff]  }
  0x22   :  { %871 = vmatpush3.bf16.msra.mxu1 %v965_v15  ;;  %532 = vmatprep.mubr.bf16.mxu1 %v52_v41  ;;  %v985_v48 = vld [vmem:[#allocation2 + $0x108] sm:$0xff]   ;;  %v990_v53 = vld [vmem:[#allocation2 + $0x160] sm:$0xff]   ;;  %v994_v59 = vld [vmem:[#allocation2 + $0x170] sm:$0xff]  }
  0x23   :  { %872 = vmatprep.subr.bf16.mxu1 %v968_v18  ;;  %v991_v54 = vld [vmem:[#allocation2 + $0x120] sm:$0xff]   ;;  %v992_v55 = vld [vmem:[#allocation2 + $0x168] sm:$0xff]   ;;  %v41_v62 = vld [vmem:[%s1174_s0 + $0x30] sm:$0xff] }
  0x24   :  { %851 = vmatpush3.bf16.msra.mxu0 %v967_v17  ;;  %v998_v56 = vld [vmem:[#allocation2 + $0x180] sm:$0xff]   ;;  %v40_v57 = vld [vmem:[%s1174_s0 + $0x28] sm:$0xff]  ;;  %v995_v1 = vld [vmem:[#allocation2 + $0x130] sm:$0xff]  }
  0x25   :  { %852 = vmatprep.subr.bf16.mxu0 %v970_v20  ;;  %v993_v58 = vld [vmem:[#allocation2 + $0x128] sm:$0xff]   ;;  %v47_v60 = vld [vmem:[%s1174_s0 + $0x60] sm:$0xff]  ;;  %v996_v2 = vld [vmem:[#allocation2 + $0x178] sm:$0xff]  }
  0x26   :  { %873 = vmatpush3.bf16.msra.mxu1 %v969_v19  ;;  %v54_v61 = vpack.c.bf16 %v47_v60, %v40_v57  ;;  %v48_v63 = vld [vmem:[%s1174_s0 + $0x68] sm:$0xff]  ;;  %v997_v3 = vld [vmem:[#allocation2 + $0x138] sm:$0xff]   ;;  %v39_v4 = vld [vmem:[%s1174_s0 + $0x20] sm:$0xff] }
  0x27   :  { %874 = vmatprep.subr.bf16.mxu1 %v972_v22  ;;  %v55_v0 = vpack.c.bf16 %v48_v63, %v41_v62  ;;  %v46_v5 = vld [vmem:[%s1174_s0 + $0x58] sm:$0xff]  ;;  %v999_v7 = vld [vmem:[%s1177_s3] sm:$0xff]   ;;  %v1000_v8 = vld [vmem:[%s1177_s3 + $0x8] sm:$0xff]  }
  0x28   :  { %853 = vmatpush3.bf16.msra.mxu0 %v971_v21  ;;  %v53_v6 = vpack.c.bf16 %v46_v5, %v39_v4  ;;  %v1001_v9 = vld [vmem:[%s1177_s3 + $0x10] sm:$0xff]   ;;  %v1002_v10 = vld [vmem:[%s1177_s3 + $0x18] sm:$0xff]   ;;  %v1003_v11 = vld [vmem:[%s1177_s3 + $0x20] sm:$0xff]  }
  0x29   :  { %854 = vmatprep.subr.bf16.mxu0 %v974_v24  ;;  %v1004_v12 = vld [vmem:[%s1177_s3 + $0x28] sm:$0xff]   ;;  %v1005_v13 = vld [vmem:[%s1177_s3 + $0x30] sm:$0xff]   ;;  %v1006_v14 = vld [vmem:[%s1177_s3 + $0x38] sm:$0xff]  }
  0x2a   :  { %875 = vmatpush3.bf16.msra.mxu1 %v973_v23  ;;  %v773_v16 = vld [vmem:[%s1176_s2] ss:$0 sm:$0xff] }
  0x2b   :  { %876 = vmatprep.subr.bf16.mxu1 %v976_v26 }
  0x2c   :  { %855 = vmatpush3.bf16.msra.mxu0 %v975_v25 }
  0x2d   :  { %856 = vmatprep.subr.bf16.mxu0 %v978_v28 }
  0x2e   :  { %877 = vmatpush3.bf16.msra.mxu1 %v977_v27 }
  0x2f   :  { %878 = vmatprep.subr.bf16.mxu1 %v980_v30 }
  0x30   :  { %857 = vmatpush3.bf16.msra.mxu0 %v979_v29 }
  0x31   :  { %886 = vmatprep.subr.bf16.mxu0 %v982_v38 }
  0x32   :  { %879 = vmatpush3.bf16.msra.mxu1 %v981_v34 }
  0x33   :  { %919 = vmatprep.subr.bf16.mxu1 %v1042_v43  ;;  %492 = vmatmul.mubr.bf16.vlgmr.msra.gmra.mrb[0].mxu0 %v49_v37 }
  0x34   :  { %887 = vmatpush3.bf16.msra.mxu0 %v983_v42  ;;  %573 = vmatprep.mubr.bf16.mxu0 %v54_v61 }
  0x35   :  { %533 = vmatmul.mubr.bf16.vlgmr.msra.gmra.mrb[0].mxu1 %v51_v46  ;;  %888 = vmatprep.subr.bf16.mxu0 %v984_v47 }
  0x36   :  { %921 = vmatprep.mubr.msk.bf16.mxu1 %vm1043_vm0, %v1042_v43  ;;  %920 = vmatpush3.bf16.msra.mxu1 %v998_v56 }
  0x37   :  { %925 = vmatprep.subr.bf16.mxu1 %v1042_v43 }
  0x38   :  { %889 = vmatpush3.bf16.msra.mxu0 %v985_v48 }
  0x39   :  { %890 = vmatprep.subr.bf16.mxu0 %v986_v49  ;;  %v824_v49 = vld [vmem:[%s1178_s4] ss:$0 sm:$0xff] }
  0x3c   :  { %891 = vmatpush3.bf16.msra.mxu0 %v987_v50 }
  0x3d   :  { %892 = vmatprep.subr.bf16.mxu0 %v988_v51  ;;  %922 = vmatmul.mubr.msk.bf16.vlgmr.msra.gmra.mrb[4].mxu1 %vm455_vm1, %v55_v0 }
  0x3e   :  { %941 = vmatprep.mubr.msk.bf16.mxu1 %vm1043_vm0, %v1042_v43  ;;  %926 = vmatpush3.bf16.msra.mxu1 %v999_v7 }
  0x3f   :  { %927 = vmatprep.subr.bf16.mxu1 %v1042_v43 }
  0x40   :  { %893 = vmatpush3.bf16.msra.mxu0 %v989_v52 }
  0x41   :  { %894 = vmatprep.subr.bf16.mxu0 %v990_v53 }
  0x42   :  { %928 = vmatpush3.bf16.msra.mxu1 %v1000_v8 }
  0x43   :  { %929 = vmatprep.subr.bf16.mxu1 %v1042_v43 }
  0x44   :  { %895 = vmatpush3.bf16.msra.mxu0 %v991_v54 }
  0x45   :  { %896 = vmatprep.subr.bf16.mxu0 %v992_v55 }
  0x46   :  { %930 = vmatpush3.bf16.msra.mxu1 %v1001_v9 }
  0x47   :  { %931 = vmatprep.subr.bf16.mxu1 %v1042_v43 }
  0x48   :  { %897 = vmatpush3.bf16.msra.mxu0 %v993_v58 }
  0x49   :  { %898 = vmatprep.subr.bf16.mxu0 %v994_v59 }
  0x4a   :  { %932 = vmatpush3.bf16.msra.mxu1 %v1002_v10 }
  0x4b   :  { %933 = vmatprep.subr.bf16.mxu1 %v1042_v43 }
  0x4c   :  { %899 = vmatpush3.bf16.msra.mxu0 %v995_v1 }
  0x4d   :  { %900 = vmatprep.subr.bf16.mxu0 %v996_v2 }
  0x4e   :  { %934 = vmatpush3.bf16.msra.mxu1 %v1003_v11 }
  0x4f   :  { %935 = vmatprep.subr.bf16.mxu1 %v1042_v43 }
  0x50   :  { %901 = vmatpush3.bf16.msra.mxu0 %v997_v3 }
  0x52   :  { %936 = vmatpush3.bf16.msra.mxu1 %v1004_v12 }
  0x53   :  { %574 = vmatmul.mubr.bf16.vlgmr.msra.gmra.mrb[4].mxu0 %v53_v6  ;;  %937 = vmatprep.subr.bf16.mxu1 %v1042_v43 }
  0x56   :  { %938 = vmatpush3.bf16.msra.mxu1 %v1005_v13 }
  0x57   :  { %939 = vmatprep.subr.bf16.mxu1 %v1042_v43 }
  0x5a   :  { %940 = vmatpush3.bf16.msra.mxu1 %v1006_v14 }
 0x106   :  { %v858_v15 = vpop.f32.mrb[0].mxu0 }
 0x107   :  { %v859_v17 = vpop.f32.mrb[1].mxu0 }
 0x108   :  { %v860_v18 = vadd.f32 %v859_v17, %v858_v15  ;;  %v861_v19 = vpop.f32.mrb[2].mxu0  ;;  %v880_v20 = vpop.f32.mrb[0].mxu1 }
 0x109   :  { %v862_v21 = vpop.f32.mrb[3].mxu0  ;;  %v881_v24 = vpop.f32.mrb[1].mxu1 }
 0x10a   :  { %v494_v22 = vadd.f32 %v860_v18, %v773_v16  ;;  %v863_v23 = vadd.f32 %v862_v21, %v861_v19  ;;  %v882_v25 = vadd.f32 %v881_v24, %v880_v20  ;;  %v883_v26 = vpop.f32.mrb[2].mxu1 }
 0x10b   :  { %v884_v28 = vpop.f32.mrb[3].mxu1 }
 0x10c   :  { %v497_v27 = vadd.f32 %v863_v23, %v773_v16  ;;  %v535_v29 = vadd.f32 %v882_v25, %v494_v22  ;;  %v885_v30 = vadd.f32 %v884_v28, %v883_v26 }
 0x10e   :  { %v538_v31 = vadd.f32 %v885_v30, %v497_v27 }
 0x110   :  { %v616_v32 = vpop.f32.mrb[4].mxu1 }
 0x111   :  { %v923_v33 = vpop.f32.mrb[5].mxu1 }
 0x112   :  { %v619_v34 = vpop.f32.mrb[6].mxu1 }
 0x113   :  { %v924_v35 = vpop.f32.mrb[7].mxu1 }
 0x126   :  { %v902_v36 = vpop.f32.mrb[4].mxu0 }
 0x127   :  { %v903_v37 = vpop.f32.mrb[5].mxu0 }
 0x128   :  { %v904_v38 = vadd.f32 %v903_v37, %v902_v36  ;;  %v905_v39 = vpop.f32.mrb[6].mxu0 }
 0x129   :  { %v906_v40 = vpop.f32.mrb[7].mxu0 }
 0x12a   :  { %v576_v41 = vadd.f32 %v904_v38, %v535_v29  ;;  %v907_v42 = vadd.f32 %v906_v40, %v905_v39 }
 0x12c   :  { %v617_v43 = vadd.f32 %v616_v32, %v576_v41  ;;  %v579_v44 = vadd.f32 %v907_v42, %v538_v31 }
 0x12e   :  { %v620_v45 = vadd.f32 %v619_v34, %v579_v44  ;;  %v623_v46 = vmax.f32 %v617_v43, 0.0 }
 0x130   :  { %v624_v47 = vmax.f32 %v620_v45, 0.0 }
 0x132   :  { %v625_v48 = vpack.c.bf16 %v624_v47, %v623_v46 }
 0x134   :  { %942 = vmatmul.mubr.bf16.vlgmr.msra.gmra.mrb[8].mxu1 %v625_v48 }
 0x207   :  { %v731_v50 = vpop.f32.mrb[8].mxu1 }
 0x208   :  { %v732_v51 = vadd.f32 %v824_v49, %v731_v50  ;;  %v943_v52 = vpop.f32.mrb[9].mxu1 }
 0x209   :  { %v734_v53 = vpop.f32.mrb[10].mxu1 }
 0x20a   :  { %738 = vmax.xlane.f32.xlu0 %v732_v51  ;;  %v944_v54 = vpop.f32.mrb[11].mxu1  ;;  %v735_v55 = vadd.f32 %v824_v49, %v734_v53 }
 0x20e   :  { %740 = vmax.xlane.f32.xlu0 %v735_v55 }
 0x297   :  { %v739_v56 = vpop.xlane.xlu0 %738 }
 0x298   :  { %v742_v57 = vsub.f32 %v732_v51, %v739_v56 }
 0x29a   :  { %v744_v58 = vmul.f32 1.442695, %v742_v57 }
 0x29b   :  { %v741_v59 = vpop.xlane.xlu0 %740 }
 0x29c   :  { %v743_v60 = vsub.f32 %v735_v55, %v741_v59  ;;  %1007 = vpow2.f32 %v744_v58 }
 0x29e   :  { %v746_v61 = vmul.f32 1.442695, %v743_v60 }
 0x2a0   :  { %1009 = vpow2.f32 %v746_v61 }
 0x2a6   :  { %v1008_v62 = vpop.eup %1007 }
 0x2a7   :  { %748 = vadd.xlane.f32.xlu1 %v1008_v62 }
 0x2aa   :  { %v1010_v63 = vpop.eup %1009 }
 0x2ab   :  { %750 = vadd.xlane.f32.xlu1 %v1010_v63 }
 0x334   :  { %v749_v0 = vpop.xlane.xlu1 %748 }
 0x335   :  { %1011 = vlog2.f32 %v749_v0 }
 0x338   :  { %v751_v1 = vpop.xlane.xlu1 %750 }
 0x339   :  { %1013 = vlog2.f32 %v751_v1 }
 0x33f   :  { %v1012_v2 = vpop.eup %1011 }
 0x340   :  { %v753_v3 = vmul.f32 0.6931472, %v1012_v2 }
 0x342   :  { %v756_v6 = vsub.f32 %v742_v57, %v753_v3 }
 0x343   :  { %v1014_v4 = vpop.eup %1013 }
 0x344   :  { %v755_v5 = vmul.f32 0.6931472, %v1014_v4 }
 0x346   :  { %v757_v7 = vsub.f32 %v743_v60, %v755_v5 }
 0x348   :  { %v840_v8 = vpack.c.bf16 %v757_v7, %v756_v6 }
 0x34a   :  { %841 = vst [vmem:[%s1179_s5] sm:$0xff] %v840_v8  }
 0x34b   :  { %772 = vsyncpa [#allocation3], 1 }

</bundles_post_ra>
